<compile_context>
chip_gen: v5e
topology: v5e:2x2
jax: 0.10.0
libtpu: 0.0.40
codegen_flags: <defaults>
</compile_context>

<pallas_src>
import functools

import numpy as np
import jax
import jax.numpy as jnp
from jax.experimental import pallas as pl
from jax.experimental.pallas import tpu as pltpu

LN_EPS = 1e-5  # torch.nn.LayerNorm default


def _cdiv(a, b):
    return (a + b - 1) // b


def _round_up(x, m):
    return _cdiv(x, m) * m


def _tpu_generation():
    """Returns (vmem_capacity_bytes, is_v7x), robust to query failures."""
    kind = ""
    try:
        kind = jax.devices()[0].device_kind.lower()
    except Exception:
        pass
    is_v7x = "v7" in kind
    vmem_cap = None
    try:
        info = pltpu.get_tpu_info()
        cap = int(getattr(info, "vmem_capacity_bytes", 0) or 0)
        vmem_cap = cap if cap > 0 else None
    except Exception:
        vmem_cap = None
    if vmem_cap is None:
        vmem_cap = (64 << 20) if is_v7x else (128 << 20)
    return vmem_cap, is_v7x


# --------------------------------------------------------------------------
# Kernel bodies
# --------------------------------------------------------------------------
def _layernorm_epilogue(y, b_row, g_row, beta_row, o_ref, c_valid, c_padded):
    """y: (tm, c_padded) f32 matmul result (pre-bias).  Bias + LayerNorm."""
    y = y + b_row
    inv_c = 1.0 / c_valid
    # Padded channel columns of y are exact zeros (zero weight cols + zero
    # bias), so summing over the padded width and dividing by the real channel
    # count is exact for the mean.
    mean = jnp.sum(y, axis=-1, keepdims=True) * inv_c
    centered = y - mean
    if c_padded != c_valid:
        # Two-pass variance: padded columns must not contribute (-mean)^2.
        mask = jax.lax.broadcasted_iota(jnp.int32, (1, c_padded), 1) < c_valid
        centered = jnp.where(mask, centered, 0.0)
    var = jnp.sum(centered * centered, axis=-1, keepdims=True) * inv_c
    # gamma/beta are zero on padded columns -> padded output columns stay zero.
    o_ref[...] = (centered * jax.lax.rsqrt(var + LN_EPS) * g_row
                  + beta_row).astype(o_ref.dtype)


def _merge_proj_ln_kernel_single(x_ref, w_ref, b_ref, g_ref, beta_ref, o_ref,
                                 *, c_valid, c_padded):
    # Single K step: whole (padded) weight resident in VMEM, no accumulator.
    y = jnp.dot(x_ref[...], w_ref[...], preferred_element_type=jnp.float32)
    _layernorm_epilogue(y, b_ref[...], g_ref[...], beta_ref[...], o_ref,
                        c_valid, c_padded)


def _merge_proj_ln_kernel_ktiled(x_ref, w_ref, b_ref, g_ref, beta_ref, o_ref,
                                 acc_ref, *, c_valid, c_padded):
    k = pl.program_id(1)

    @pl.when(k == 0)
    def _():
        acc_ref[...] = jnp.zeros_like(acc_ref)

    acc_ref[...] += jnp.dot(x_ref[...], w_ref[...],
                            preferred_element_type=jnp.float32)

    @pl.when(k == pl.num_programs(1) - 1)
    def _():
        _layernorm_epilogue(acc_ref[...], b_ref[...], g_ref[...], beta_ref[...],
                            o_ref, c_valid, c_padded)


# --------------------------------------------------------------------------
# Wrapper
# --------------------------------------------------------------------------
def merge_proj_layernorm(x2d, w, b, gamma, beta, *, compute_dtype=jnp.bfloat16,
                         out_dtype=None, tm=None):
    """(N, total) -> (N, c_out) = LayerNorm(x2d @ w + b) * gamma + beta, fused."""
    N, total = x2d.shape
    total_w, c_out = w.shape
    assert total == total_w
    if out_dtype is None:
        # bf16 output halves the writeback and the downstream transpose pass.
        out_dtype = compute_dtype

    compute_bytes = np.dtype(compute_dtype).itemsize
    out_bytes = np.dtype(out_dtype).itemsize

    # ---- generation-aware budgets -------------------------------------------
    vmem_cap, is_v7x = _tpu_generation()
    if vmem_cap <= (64 << 20):          # v7x: 64 MiB physical VMEM
        vmem_ceiling = 52 << 20
        max_w_block_bytes = 12 << 20
    else:                               # v5e/v6e (128 MiB VMEM)
        vmem_ceiling = 100 << 20
        max_w_block_bytes = 40 << 20

    c_pad = _round_up(c_out, 128)       # lane-dense output -> unmasked stores
    k_pad = _round_up(total, 128)

    # ---- K tiling -----------------------------------------------------------
    # Keep the whole weight resident (single K step, DMA'd once) whenever it
    # fits the generation-aware cap; otherwise split K into balanced blocks.
    if k_pad * c_pad * compute_bytes <= max_w_block_bytes:
        tk = k_pad
    else:
        tk_cap = max(128, (max_w_block_bytes // (c_pad * compute_bytes)) // 128 * 128)
        n_k_est = _cdiv(k_pad, tk_cap)
        tk = _round_up(_cdiv(k_pad, n_k_est), 128)
        k_pad = tk * n_k_est
    n_k = k_pad // tk

    # ---- row tile -----------------------------------------------------------
    if tm is None:
        # Bigger tm when the weight must be re-streamed per row tile (n_k > 1).
        tm = 512 if n_k > 1 else 256
        if is_v7x and N < 2 * tm:
            # 2 TensorCores: keep >=2 row tiles so the parallel axis can shard.
            tm = max(8, _round_up(_cdiv(N, 2), 8))
        else:
            # single TC (v5e/v6e): never split just for parallelism; only clamp
            # to the rows actually available (avoids padded-row compute).
            tm = min(tm, _round_up(N, 8))
    tm = max(8, _round_up(tm, 8))

    # Prefer a tm that divides N exactly (skips the row-padding copy of X).
    if N % tm != 0:
        for cand in range(tm - 8, max(8, tm // 2) - 1, -8):
            if N % cand == 0:
                tm = cand
                break

    # Shrink tm if the VMEM working set would exceed the per-generation budget.
    def _vmem_needed(tm_):
        x_bufs = 3 if (is_v7x and n_k == 1) else 2
        need = (x_bufs * tm_ * tk * compute_bytes       # X tiles (multi-buffered)
                + 2 * tk * c_pad * compute_bytes        # weight block buffers
                + 2 * tm_ * c_pad * out_bytes           # output tile buffers
                + 8 * c_pad * 4)                        # bias / gamma / beta
        if n_k > 1:
            need += tm_ * c_pad * 4                     # f32 accumulator scratch
        return need

    while tm > 8 and _vmem_needed(tm) > vmem_ceiling:
        tm = max(8, _round_up(tm // 2, 8))

    n_pad = _round_up(N, tm)

    # ---- operand prep (zero padding keeps the math exact; skip when aligned) --
    xp = x2d.astype(compute_dtype)
    if n_pad != N or k_pad != total:
        xp = jnp.pad(xp, ((0, n_pad - N), (0, k_pad - total)))
    wp = w.astype(compute_dtype)
    if k_pad != total or c_pad != c_out:
        wp = jnp.pad(wp, ((0, k_pad - total), (0, c_pad - c_out)))

    def _row(v):
        v = v.astype(jnp.float32)
        if c_pad != c_out:
            v = jnp.pad(v, (0, c_pad - c_out))
        return v.reshape(1, c_pad)

    bp, gp, betap = _row(b), _row(gamma), _row(beta)

    vmem_limit = int(min(max(int(_vmem_needed(tm) * 1.5) + (2 << 20), 32 << 20),
                         vmem_ceiling))

    # ---- grid / specs ---------------------------------------------------------
    if n_k == 1:
        x_spec = pl.BlockSpec((tm, tk), lambda i: (i, 0))
        if is_v7x:
            # Deeper X prefetch when the weight is resident (cheap: tm*tk*2 B).
            try:
                x_spec = pl.BlockSpec((tm, tk), lambda i: (i, 0),
                                      pipeline_mode=pl.Buffered(3))
            except TypeError:
                pass
        kernel = functools.partial(_merge_proj_ln_kernel_single,
                                   c_valid=c_out, c_padded=c_pad)
        grid_spec = pltpu.PrefetchScalarGridSpec(
            num_scalar_prefetch=0,
            grid=(n_pad // tm,),
            in_specs=[
                x_spec,                                          # X row tile
                pl.BlockSpec((tk, c_pad), lambda i: (0, 0)),     # resident weight
                pl.BlockSpec((1, c_pad), lambda i: (0, 0)),      # proj bias
                pl.BlockSpec((1, c_pad), lambda i: (0, 0)),      # LN gamma
                pl.BlockSpec((1, c_pad), lambda i: (0, 0)),      # LN beta
            ],
            out_specs=pl.BlockSpec((tm, c_pad), lambda i: (i, 0)),
            scratch_shapes=[],
        )
        dim_sem = ("parallel",)
    else:
        kernel = functools.partial(_merge_proj_ln_kernel_ktiled,
                                   c_valid=c_out, c_padded=c_pad)
        grid_spec = pltpu.PrefetchScalarGridSpec(
            num_scalar_prefetch=0,
            grid=(n_pad // tm, n_k),
            in_specs=[
                pl.BlockSpec((tm, tk), lambda i, k: (i, k)),     # X row/K tile
                pl.BlockSpec((tk, c_pad), lambda i, k: (k, 0)),  # weight K block
                pl.BlockSpec((1, c_pad), lambda i, k: (0, 0)),   # proj bias
                pl.BlockSpec((1, c_pad), lambda i, k: (0, 0)),   # LN gamma
                pl.BlockSpec((1, c_pad), lambda i, k: (0, 0)),   # LN beta
            ],
            out_specs=pl.BlockSpec((tm, c_pad), lambda i, k: (i, 0)),
            scratch_shapes=[pltpu.VMEM((tm, c_pad), jnp.float32)],
        )
        dim_sem = ("parallel", "arbitrary")

    out = pl.pallas_call(
        kernel,
        out_shape=jax.ShapeDtypeStruct((n_pad, c_pad), out_dtype),
        grid_spec=grid_spec,
        compiler_params=pltpu.CompilerParams(
            dimension_semantics=dim_sem,
            vmem_limit_bytes=vmem_limit,
        ),
    )(xp, wp, bp, gp, betap)

    if n_pad != N or c_pad != c_out:
        out = out[:N, :c_out]
    return out


def merge3d_forward(x, params, kernel_size, *, compute_dtype=jnp.bfloat16,
                    out_dtype=None, channels_last=False):
    """x: (b, c, D, H, W) -> (b, C_out, d, h, w)   (matches PyTorch Merge3d)."""
    b, c, D, H, W = x.shape
    dk, hk, wk = kernel_size
    d, h, w = D // dk, H // hk, W // wk

    # Cast to the compute dtype BEFORE the bandwidth-bound patch-merge relayout
    # so the transpose moves 2-byte elements instead of 4-byte ones.
    xr = x.astype(compute_dtype).reshape(b, c, d, dk, h, hk, w, wk)
    # einops: 'b c (d dk) (h hk) (w wk) -> b d h w (dk hk wk c)'
    xr = jnp.transpose(xr, (0, 2, 4, 6, 3, 5, 7, 1))
    x2d = xr.reshape(b * d * h * w, dk * hk * wk * c)

    y2d = merge_proj_layernorm(
        x2d, params["proj_w"], params["proj_b"], params["ln_g"], params["ln_b"],
        compute_dtype=compute_dtype, out_dtype=out_dtype)

    # TODO(synk): sampling-mode dropout (training or enable_sampling=True)
    # would need pltpu.prng_* in-kernel; eval-mode dropout is the identity.

    c_out = params["proj_w"].shape[1]
    y = y2d.reshape(b, d, h, w, c_out)
    if channels_last:
        return y  # (b, d, h, w, c): lets consumers skip a full HBM transpose
    # einops: 'b d h w c -> b c d h w'
    return jnp.transpose(y, (0, 4, 1, 2, 3))


def init_merge3d_params(key, in_channels, kernel_size, out_channels=None):
    dk, hk, wk = kernel_size
    total = in_channels * dk * hk * wk
    if out_channels is None:
        out_channels = total // 2
    # trunc_normal_(std=0.02) on proj.weight; torch Linear weight is (out, in),
    # stored transposed as (in, out) for x @ W.
    w = 0.02 * jax.random.truncated_normal(
        key, -2.0, 2.0, (total, out_channels), dtype=jnp.float32
    )
    return {
        "proj_w": w,
        "proj_b": jnp.zeros((out_channels,), jnp.float32),
        "ln_g": jnp.ones((out_channels,), jnp.float32),
        "ln_b": jnp.zeros((out_channels,), jnp.float32),
    }


if __name__ == "__main__":
    # Small, deterministic example consistent with the module:
    # in_channels=4, kernel_size=(2,2,2) -> total=32, out_channels=16
    in_channels = 4
    kernel_size = (2, 2, 2)
    b, D, H, W = 2, 8, 8, 8   # -> d=h=w=4, N = 2*4*4*4 = 128 tokens

    key = jax.random.PRNGKey(0)
    k_x, k_w = jax.random.split(key)

    x = jax.random.normal(k_x, (b, in_channels, D, H, W), dtype=jnp.float32)
    params = init_merge3d_params(k_w, in_channels, kernel_size)

    fwd = jax.jit(functools.partial(merge3d_forward, kernel_size=kernel_size))
    out = fwd(x, params)
    jax.block_until_ready(out)

    expected_shape = (b, params["proj_w"].shape[1], D // 2, H // 2, W // 2)
    assert out.shape == expected_shape, (out.shape, expected_shape)
    assert bool(jnp.isfinite(out.astype(jnp.float32)).all())

    # Pure-JAX f32 reference of the same forward (rearrange + Linear + LN).
    def ref_fwd(xv, p):
        xr = xv.reshape(b, in_channels, D // 2, 2, H // 2, 2, W // 2, 2)
        xr = jnp.transpose(xr, (0, 2, 4, 6, 3, 5, 7, 1)).reshape(-1, in_channels * 8)
        y = xr @ p["proj_w"] + p["proj_b"]
        mu = y.mean(-1, keepdims=True)
        var = ((y - mu) ** 2).mean(-1, keepdims=True)
        y = (y - mu) / jnp.sqrt(var + LN_EPS) * p["ln_g"] + p["ln_b"]
        y = y.reshape(b, D // 2, H // 2, W // 2, -1)
        return jnp.transpose(y, (0, 4, 1, 2, 3))

    ref = ref_fwd(x, params)
    err = float(jnp.max(jnp.abs(out.astype(jnp.float32) - ref)))
    assert err < 1e-1, err  # bf16 MXU operands / bf16 output vs f32 reference

    print("KERNEL_OK")
</pallas_src>

<mosaic_0001>
module attributes {stable_mosaic.version = 11 : i64} {
  func.func @_merge_proj_ln_kernel_single(%arg0: i32, %arg1: memref<128x128xbf16, #tpu.memory_space<vmem>>, %arg2: memref<128x128xbf16, #tpu.memory_space<vmem>>, %arg3: memref<1x128xf32, #tpu.memory_space<vmem>>, %arg4: memref<1x128xf32, #tpu.memory_space<vmem>>, %arg5: memref<1x128xf32, #tpu.memory_space<vmem>>, %arg6: memref<128x128xbf16, #tpu.memory_space<vmem>>) attributes {dimension_semantics = [#tpu.dimension_semantics<parallel>], iteration_bounds = array<i64: 1>, scalar_prefetch = 0 : i64, scratch_operands = 0 : i64, tpu.core_type = #tpu.core_type<tc>, window_params = [{transform_indices = @transform_0, window_bounds = array<i64: 128, 128>}, {pipeline_mode = #tpu.pipeline_mode<synchronous>, transform_indices = @transform_1, window_bounds = array<i64: 128, 128>}, {pipeline_mode = #tpu.pipeline_mode<synchronous>, transform_indices = @transform_2, window_bounds = array<i64: 1, 128>}, {pipeline_mode = #tpu.pipeline_mode<synchronous>, transform_indices = @transform_3, window_bounds = array<i64: 1, 128>}, {pipeline_mode = #tpu.pipeline_mode<synchronous>, transform_indices = @transform_4, window_bounds = array<i64: 1, 128>}, {transform_indices = @transform_5, window_bounds = array<i64: 128, 128>}]} {
    %c0 = arith.constant 0 : index
    %c0_0 = arith.constant 0 : index
    %0 = vector.load %arg1[%c0, %c0_0] : memref<128x128xbf16, #tpu.memory_space<vmem>>, vector<128x128xbf16>
    %c0_1 = arith.constant 0 : index
    %c0_2 = arith.constant 0 : index
    %1 = vector.load %arg2[%c0_1, %c0_2] : memref<128x128xbf16, #tpu.memory_space<vmem>>, vector<128x128xbf16>
    %cst = arith.constant dense<0.000000e+00> : vector<128x128xf32>
    %2 = tpu.matmul %0, %1, %cst {dimension_numbers = #tpu.dot_dimension_numbers<[1], [0], [0], [1], [0, 0, 1, 1], [], []>} : vector<128x128xbf16>, vector<128x128xbf16>, vector<128x128xf32> -> vector<128x128xf32>
    %c0_3 = arith.constant 0 : index
    %c0_4 = arith.constant 0 : index
    %3 = vector.load %arg3[%c0_3, %c0_4] : memref<1x128xf32, #tpu.memory_space<vmem>>, vector<1x128xf32>
    %c0_5 = arith.constant 0 : index
    %c0_6 = arith.constant 0 : index
    %4 = vector.load %arg4[%c0_5, %c0_6] : memref<1x128xf32, #tpu.memory_space<vmem>>, vector<1x128xf32>
    %c0_7 = arith.constant 0 : index
    %c0_8 = arith.constant 0 : index
    %5 = vector.load %arg5[%c0_7, %c0_8] : memref<1x128xf32, #tpu.memory_space<vmem>>, vector<1x128xf32>
    %6 = vector.broadcast %3 : vector<1x128xf32> to vector<128x128xf32>
    %7 = arith.addf %2, %6 : vector<128x128xf32>
    %cst_9 = arith.constant dense<0.000000e+00> : vector<128xf32>
    %8 = vector.multi_reduction <add>, %7, %cst_9 [1] : vector<128x128xf32> to vector<128xf32>
    %9 = vector.shape_cast %8 : vector<128xf32> to vector<128x1xf32>
    %cst_10 = arith.constant 6.250000e-02 : f32
    %10 = vector.broadcast %cst_10 : f32 to vector<128x1xf32>
    %11 = arith.mulf %9, %10 : vector<128x1xf32>
    %12 = vector.broadcast %11 : vector<128x1xf32> to vector<128x128xf32>
    %13 = arith.subf %7, %12 : vector<128x128xf32>
    %14 = tpu.iota {dimensions = array<i32: 1>} : vector<1x128xi32>
    %c16_i32 = arith.constant 16 : i32
    %15 = vector.broadcast %c16_i32 : i32 to vector<1x128xi32>
    %16 = arith.cmpi slt, %14, %15 : vector<1x128xi32>
    %cst_11 = arith.constant 0.000000e+00 : f32
    %17 = vector.shape_cast %16 : vector<1x128xi1> to vector<1x128xi1>
    %18 = vector.broadcast %17 : vector<1x128xi1> to vector<128x128xi1>
    %19 = vector.broadcast %cst_11 : f32 to vector<128x128xf32>
    %20 = arith.select %18, %13, %19 : vector<128x128xi1>, vector<128x128xf32>
    %21 = arith.mulf %20, %20 : vector<128x128xf32>
    %cst_12 = arith.constant dense<0.000000e+00> : vector<128xf32>
    %22 = vector.multi_reduction <add>, %21, %cst_12 [1] : vector<128x128xf32> to vector<128xf32>
    %23 = vector.shape_cast %22 : vector<128xf32> to vector<128x1xf32>
    %cst_13 = arith.constant 6.250000e-02 : f32
    %24 = vector.broadcast %cst_13 : f32 to vector<128x1xf32>
    %25 = arith.mulf %23, %24 : vector<128x1xf32>
    %cst_14 = arith.constant 9.99999974E-6 : f32
    %26 = vector.broadcast %cst_14 : f32 to vector<128x1xf32>
    %27 = arith.addf %25, %26 : vector<128x1xf32>
    %28 = math.rsqrt %27 : vector<128x1xf32>
    %29 = vector.broadcast %28 : vector<128x1xf32> to vector<128x128xf32>
    %30 = arith.mulf %20, %29 : vector<128x128xf32>
    %31 = vector.broadcast %4 : vector<1x128xf32> to vector<128x128xf32>
    %32 = arith.mulf %30, %31 : vector<128x128xf32>
    %33 = vector.broadcast %5 : vector<1x128xf32> to vector<128x128xf32>
    %34 = arith.addf %32, %33 : vector<128x128xf32>
    %35 = arith.truncf %34 : vector<128x128xf32> to vector<128x128xbf16>
    %c0_15 = arith.constant 0 : index
    %c0_16 = arith.constant 0 : index
    %36 = vector.load %arg6[%c0_15, %c0_16] : memref<128x128xbf16, #tpu.memory_space<vmem>>, vector<128x128xbf16>
    tpu.vector_store %arg6[%c0_15, %c0_16], %35 {strides = array<i32>} : memref<128x128xbf16, #tpu.memory_space<vmem>>, vector<128x128xbf16>,
    return
  }
  func.func @transform_0(%arg0: i32) -> (i32, i32) {
    %c0_i32 = arith.constant 0 : i32
    %c0_i32_0 = arith.constant 0 : i32
    return %arg0, %c0_i32 : i32, i32
  }
  func.func @transform_1(%arg0: i32) -> (i32, i32) {
    %c0_i32 = arith.constant 0 : i32
    %c0_i32_0 = arith.constant 0 : i32
    %c0_i32_1 = arith.constant 0 : i32
    return %c0_i32, %c0_i32_0 : i32, i32
  }
  func.func @transform_2(%arg0: i32) -> (i32, i32) {
    %c0_i32 = arith.constant 0 : i32
    %c0_i32_0 = arith.constant 0 : i32
    %c0_i32_1 = arith.constant 0 : i32
    return %c0_i32, %c0_i32_0 : i32, i32
  }
  func.func @transform_3(%arg0: i32) -> (i32, i32) {
    %c0_i32 = arith.constant 0 : i32
    %c0_i32_0 = arith.constant 0 : i32
    %c0_i32_1 = arith.constant 0 : i32
    return %c0_i32, %c0_i32_0 : i32, i32
  }
  func.func @transform_4(%arg0: i32) -> (i32, i32) {
    %c0_i32 = arith.constant 0 : i32
    %c0_i32_0 = arith.constant 0 : i32
    %c0_i32_1 = arith.constant 0 : i32
    return %c0_i32, %c0_i32_0 : i32, i32
  }
  func.func @transform_5(%arg0: i32) -> (i32, i32) {
    %c0_i32 = arith.constant 0 : i32
    %c0_i32_0 = arith.constant 0 : i32
    return %arg0, %c0_i32 : i32, i32
  }
}

</mosaic_0001>

<bundles_post_ra>
// kernel: merge3d_forward.1
= control target key start
LH: loop header
LB: loop body
LE: loop exit
PB: predicated region body
PF: predicated region fallthrough
CT: control target
= control target key end

     0   :  { %s1341_s0 = inlined_call_operand.vmem [shape: bf16[128,128], index: 0, kind: input, shape index: {}]   ;;  %s1342_s1 = inlined_call_operand.vmem [shape: bf16[128,128], index: 1, kind: input, shape index: {}]   ;;  %s1343_s2 = inlined_call_operand.vmem [shape: f32[1,128], index: 2, kind: input, shape index: {}]   ;;  %s1344_s3 = inlined_call_operand.vmem [shape: f32[1,128], index: 3, kind: input, shape index: {}]   ;;  %s1345_s4 = inlined_call_operand.vmem [shape: f32[1,128], index: 4, kind: input, shape index: {}]   ;;  %s1346_s5 = inlined_call_operand.hbm [shape: bf16[128,128], index: 5, kind: output, shape index: {}]  }
   0x1   :  { %v712_v0 = vld [vmem:[%s1342_s1 + $0x38] sm:$0xff]  ;;  %v711_v1 = vld [vmem:[%s1342_s1 + $0x30] sm:$0xff] }
   0x2   :  { %155 = vmatpush.bf16.msra.mxu0 %v712_v0  ;;  %760 = vmatpush.bf16.msra.mxu1 %v712_v0 }
   0x3   :  { %761 = vmatpush.bf16.msra.mxu2 %v712_v0  ;;  %762 = vmatpush.bf16.msra.mxu3 %v712_v0 }
   0x4   :  { %10 = vsyncpa [#allocation3], 0  ;;  %v710_v2 = vld [vmem:[%s1342_s1 + $0x28] sm:$0xff]  ;;  %v709_v3 = vld [vmem:[%s1342_s1 + $0x20] sm:$0xff]  ;;  %v268_v49 = vlaneseq  ;;  %s621_s30 = sshll.u32 %s1346_s5, 4  ;;  %s849_s6 = smov 64   ;;  %s622_s30 = int_to_ptr.hbm [resolvable:$true] %s621_s30 }
   0x5   :  { %v708_v4 = vld [vmem:[%s1342_s1 + $0x18] sm:$0xff]  ;;  %v707_v5 = vld [vmem:[%s1342_s1 + $0x10] sm:$0xff]  ;;  %v706_v6 = vld [vmem:[%s1342_s1 + $0x8] sm:$0xff]  ;;  %s850_s7 = smov 4  }
   0x6   :  { %156 = vmatpush.bf16.msra.mxu0 %v711_v1  ;;  %763 = vmatpush.bf16.msra.mxu1 %v711_v1  ;;  %v705_v7 = vld [vmem:[%s1342_s1] sm:$0xff]  ;;  %v699_v9 = vld [vmem:[%s1341_s0 + $0x10] sm:$0xff]  ;;  %v698_v12 = vld [vmem:[%s1341_s0 + $0x8] sm:$0xff]  ;;  %v968_v50 = vand.u32 127, %v268_v49 }
   0x7   :  { %764 = vmatpush.bf16.msra.mxu2 %v711_v1  ;;  %765 = vmatpush.bf16.msra.mxu3 %v711_v1  ;;  %v697_v8 = vld [vmem:[%s1341_s0] sm:$0xff]  ;;  %v703_v11 = vld [vmem:[%s1341_s0 + $0x30] sm:$0xff]  ;;  %v700_v13 = vld [vmem:[%s1341_s0 + $0x18] sm:$0xff] }
   0x8   :  { %v701_v10 = vld [vmem:[%s1341_s0 + $0x20] sm:$0xff]  ;;  %v702_v14 = vld [vmem:[%s1341_s0 + $0x28] sm:$0xff]  ;;  %v704_v15 = vld [vmem:[%s1341_s0 + $0x38] sm:$0xff]  ;;  %vm270_vm0 = vcmp.lt.s32.totalorder %v968_v50, 16 }
   0x9   :  { %v787_v16 = vld [vmem:[%s1343_s2] ss:$0 sm:$0xff] }
   0xa   :  { %157 = vmatpush.bf16.msra.mxu0 %v710_v2  ;;  %766 = vmatpush.bf16.msra.mxu1 %v710_v2 }
   0xb   :  { %767 = vmatpush.bf16.msra.mxu2 %v710_v2  ;;  %768 = vmatpush.bf16.msra.mxu3 %v710_v2 }
   0xe   :  { %158 = vmatpush.bf16.msra.mxu0 %v709_v3  ;;  %769 = vmatpush.bf16.msra.mxu1 %v709_v3 }
   0xf   :  { %770 = vmatpush.bf16.msra.mxu2 %v709_v3  ;;  %771 = vmatpush.bf16.msra.mxu3 %v709_v3 }
  0x12   :  { %159 = vmatpush.bf16.msra.mxu0 %v708_v4  ;;  %772 = vmatpush.bf16.msra.mxu1 %v708_v4 }
  0x13   :  { %773 = vmatpush.bf16.msra.mxu2 %v708_v4  ;;  %774 = vmatpush.bf16.msra.mxu3 %v708_v4 }
  0x16   :  { %160 = vmatpush.bf16.msra.mxu0 %v707_v5  ;;  %775 = vmatpush.bf16.msra.mxu1 %v707_v5 }
  0x17   :  { %776 = vmatpush.bf16.msra.mxu2 %v707_v5  ;;  %777 = vmatpush.bf16.msra.mxu3 %v707_v5 }
  0x1a   :  { %161 = vmatpush.bf16.msra.mxu0 %v706_v6  ;;  %778 = vmatpush.bf16.msra.mxu1 %v706_v6 }
  0x1b   :  { %779 = vmatpush.bf16.msra.mxu2 %v706_v6  ;;  %780 = vmatpush.bf16.msra.mxu3 %v706_v6 }
  0x1e   :  { %162 = vmatpush.bf16.msra.mxu0 %v705_v7  ;;  %781 = vmatpush.bf16.msra.mxu1 %v705_v7 }
  0x1f   :  { %782 = vmatpush.bf16.msra.mxu2 %v705_v7  ;;  %783 = vmatpush.bf16.msra.mxu3 %v705_v7 }
  0x21   :  { %163 = vmatmul.bf16.vlgmr.msra.gmra.mxu0 %v697_v8  ;;  %173 = vmatmul.bf16.vlgmr.msra.gmra.mxu1 %v699_v9 }
  0x22   :  { %183 = vmatmul.bf16.vlgmr.msra.gmra.mxu2 %v701_v10  ;;  %193 = vmatmul.bf16.vlgmr.msra.gmra.mxu3 %v703_v11 }
  0x31   :  { %168 = vmatmul.bf16.gmra.mxu0 %v698_v12  ;;  %178 = vmatmul.bf16.gmra.mxu1 %v700_v13 }
  0x32   :  { %188 = vmatmul.bf16.gmra.mxu2 %v702_v14  ;;  %198 = vmatmul.bf16.gmra.mxu3 %v704_v15 }
  0x9e   :  { %v164_v17 = vpop.f32.mrf.mxu0  ;;  %v174_v18 = vpop.f32.mrf.mxu1 }
  0x9f   :  { %v165_v19 = vadd.f32 %v787_v16, %v164_v17  ;;  %v175_v20 = vadd.f32 %v787_v16, %v174_v18 }
  0xa1   :  { %212 = vadd.xlane.f32.xlu2 %v175_v20  ;;  %204 = vadd.xlane.f32.xlu0 %v165_v19 }
  0xa5   :  { %v184_v21 = vpop.f32.mrf.mxu2  ;;  %v194_v22 = vpop.f32.mrf.mxu3 }
  0xa6   :  { %v185_v23 = vadd.f32 %v787_v16, %v184_v21  ;;  %v195_v24 = vadd.f32 %v787_v16, %v194_v22  ;;  %v166_v25 = vpop.f32.mrf.mxu0  ;;  %v176_v26 = vpop.f32.mrf.mxu1 }
  0xa7   :  { %v934_v30 = vadd.f32 %v787_v16, %v166_v25  ;;  %v936_v31 = vadd.f32 %v787_v16, %v176_v26 }
  0xa9   :  { %220 = vadd.xlane.f32.xlu2 %v185_v23  ;;  %228 = vadd.xlane.f32.xlu0 %v195_v24 }
  0xad   :  { %v186_v27 = vpop.f32.mrf.mxu2  ;;  %v196_v28 = vpop.f32.mrf.mxu3 }
  0xae   :  { %v932_v29 = vadd.f32 %v787_v16, %v196_v28  ;;  %v169_v32 = vpop.f32.mrf.mxu0  ;;  %v943_v35 = vadd.f32 %v787_v16, %v186_v27  ;;  %v179_v38 = vpop.f32.mrf.mxu1 }
  0xaf   :  { %v941_v33 = vadd.f32 %v787_v16, %v169_v32  ;;  %v949_v39 = vadd.f32 %v787_v16, %v179_v38 }
  0xb0   :  { %230 = vadd.xlane.f32.xlu1 %v932_v29 }
  0xb1   :  { %214 = vadd.xlane.f32.xlu2 %v936_v31  ;;  %206 = vadd.xlane.f32.xlu0 %v934_v30 }
  0xb5   :  { %v189_v34 = vpop.f32.mrf.mxu2  ;;  %v199_v36 = vpop.f32.mrf.mxu3 }
  0xb6   :  { %v947_v37 = vadd.f32 %v787_v16, %v189_v34  ;;  %v171_v43 = vpop.f32.mrf.mxu0  ;;  %v956_v44 = vadd.f32 %v787_v16, %v199_v36  ;;  %v181_v47 = vpop.f32.mrf.mxu1 }
  0xb7   :  { %v960_v46 = vadd.f32 %v787_v16, %v171_v43  ;;  %v965_v48 = vadd.f32 %v787_v16, %v181_v47 }
  0xb8   :  { %208 = vadd.xlane.f32.xlu1 %v941_v33 }
  0xb9   :  { %222 = vadd.xlane.f32.xlu0 %v943_v35 }
  0xbd   :  { %v191_v40 = vpop.f32.mrf.mxu2  ;;  %v201_v42 = vpop.f32.mrf.mxu3 }
  0xbe   :  { %v951_v41 = vadd.f32 %v787_v16, %v191_v40  ;;  %v958_v45 = vadd.f32 %v787_v16, %v201_v42 }
  0xc0   :  { %226 = vadd.xlane.f32.xlu2 %v951_v41  ;;  %224 = vadd.xlane.f32.xlu1 %v947_v37 }
  0xc1   :  { %216 = vadd.xlane.f32.xlu0 %v949_v39 }
  0xc8   :  { %232 = vadd.xlane.f32.xlu2 %v956_v44  ;;  %210 = vadd.xlane.f32.xlu1 %v960_v46 }
  0xc9   :  { %234 = vadd.xlane.f32.xlu0 %v958_v45 }
  0xd0   :  { %218 = vadd.xlane.f32.xlu1 %v965_v48 }
 0x114   :  { %v213_v51 = vpop.xlane.xlu2 %212  ;;  %v205_v52 = vpop.xlane.xlu0 %204 }
 0x115   :  { %v240_v53 = vmul.f32 0.0625, %v213_v51  ;;  %v236_v54 = vmul.f32 0.0625, %v205_v52 }
 0x117   :  { %v256_v55 = vsub.f32 %v175_v20, %v240_v53  ;;  %v252_v56 = vsub.f32 %v165_v19, %v236_v54 }
 0x119   :  { %v973_v57 = vsel %vm270_vm0, %v256_v55, 0.0  ;;  %v977_v58 = vsel %vm270_vm0, %v252_v56, 0.0 }
 0x11a   :  { %v293_v59 = vmul.f32 %v973_v57, %v973_v57  ;;  %v289_v60 = vmul.f32 %v977_v58, %v977_v58 }
 0x11c   :  { %313 = vadd.xlane.f32.xlu2 %v293_v59  ;;  %v221_v61 = vpop.xlane.xlu2 %220  ;;  %305 = vadd.xlane.f32.xlu1 %v289_v60  ;;  %v229_v62 = vpop.xlane.xlu0 %228 }
 0x11d   :  { %v244_v63 = vmul.f32 0.0625, %v221_v61  ;;  %v248_v0 = vmul.f32 0.0625, %v229_v62 }
 0x11f   :  { %v260_v1 = vsub.f32 %v185_v23, %v244_v63  ;;  %v264_v2 = vsub.f32 %v195_v24, %v248_v0 }
 0x121   :  { %v985_v3 = vsel %vm270_vm0, %v260_v1, 0.0  ;;  %v989_v4 = vsel %vm270_vm0, %v264_v2, 0.0 }
 0x122   :  { %v297_v5 = vmul.f32 %v985_v3, %v985_v3  ;;  %v301_v6 = vmul.f32 %v989_v4, %v989_v4 }
 0x123   :  { %v231_v7 = vpop.xlane.xlu1 %230 }
 0x124   :  { %v215_v8 = vpop.xlane.xlu2 %214  ;;  %321 = vadd.xlane.f32.xlu0 %v297_v5  ;;  %329 = vadd.xlane.f32.xlu1 %v301_v6  ;;  %v207_v9 = vpop.xlane.xlu0 %206 }
 0x125   :  { %v241_v10 = vmul.f32 0.0625, %v215_v8  ;;  %v237_v11 = vmul.f32 0.0625, %v207_v9 }
 0x127   :  { %v257_v12 = vsub.f32 %v936_v31, %v241_v10  ;;  %v253_v13 = vsub.f32 %v934_v30, %v237_v11 }
 0x129   :  { %v999_v14 = vsel %vm270_vm0, %v257_v12, 0.0  ;;  %v1003_v15 = vsel %vm270_vm0, %v253_v13, 0.0 }
 0x12a   :  { %v294_v16 = vmul.f32 %v999_v14, %v999_v14  ;;  %v290_v17 = vmul.f32 %v1003_v15, %v1003_v15 }
 0x12b   :  { %v209_v18 = vpop.xlane.xlu1 %208 }
 0x12c   :  { %v238_v19 = vmul.f32 0.0625, %v209_v18  ;;  %315 = vadd.xlane.f32.xlu0 %v294_v16  ;;  %307 = vadd.xlane.f32.xlu2 %v290_v17  ;;  %v223_v20 = vpop.xlane.xlu0 %222 }
 0x12d   :  { %v245_v21 = vmul.f32 0.0625, %v223_v20 }
 0x12e   :  { %v254_v22 = vsub.f32 %v941_v33, %v238_v19 }
 0x12f   :  { %v261_v23 = vsub.f32 %v943_v35, %v245_v21 }
 0x130   :  { %v1013_v24 = vsel %vm270_vm0, %v254_v22, 0.0 }
 0x131   :  { %v1017_v25 = vsel %vm270_vm0, %v261_v23, 0.0  ;;  %v291_v26 = vmul.f32 %v1013_v24, %v1013_v24 }
 0x132   :  { %v298_v27 = vmul.f32 %v1017_v25, %v1017_v25 }
 0x133   :  { %v227_v28 = vpop.xlane.xlu2 %226  ;;  %v225_v30 = vpop.xlane.xlu1 %224 }
 0x134   :  { %v247_v31 = vmul.f32 0.0625, %v227_v28  ;;  %v246_v32 = vmul.f32 0.0625, %v225_v30  ;;  %309 = vadd.xlane.f32.xlu0 %v291_v26  ;;  %323 = vadd.xlane.f32.xlu1 %v298_v27  ;;  %v217_v33 = vpop.xlane.xlu0 %216 }
 0x135   :  { %v242_v34 = vmul.f32 0.0625, %v217_v33 }
 0x136   :  { %v263_v35 = vsub.f32 %v951_v41, %v247_v31  ;;  %v262_v36 = vsub.f32 %v947_v37, %v246_v32 }
 0x137   :  { %v258_v38 = vsub.f32 %v949_v39, %v242_v34 }
 0x138   :  { %v1028_v40 = vsel %vm270_vm0, %v262_v36, 0.0  ;;  %v1032_v42 = vsel %vm270_vm0, %v263_v35, 0.0 }
 0x139   :  { %v299_v43 = vmul.f32 %v1028_v40, %v1028_v40  ;;  %v1038_v47 = vsel %vm270_vm0, %v258_v38, 0.0  ;;  %v300_v37 = vmul.f32 %v1032_v42, %v1032_v42 }
 0x13a   :  { %v295_v39 = vmul.f32 %v1038_v47, %v1038_v47 }
 0x13b   :  { %v233_v41 = vpop.xlane.xlu2 %232  ;;  %v211_v49 = vpop.xlane.xlu1 %210  ;;  %325 = vadd.xlane.f32.xlu2 %v299_v43 }
 0x13c   :  { %v250_v51 = vmul.f32 0.0625, %v233_v41  ;;  %v239_v52 = vmul.f32 0.0625, %v211_v49  ;;  %327 = vadd.xlane.f32.xlu0 %v300_v37  ;;  %317 = vadd.xlane.f32.xlu1 %v295_v39  ;;  %v235_v53 = vpop.xlane.xlu0 %234 }
 0x13d   :  { %v251_v56 = vmul.f32 0.0625, %v235_v53 }
 0x13e   :  { %v266_v54 = vsub.f32 %v956_v44, %v250_v51  ;;  %v255_v55 = vsub.f32 %v960_v46, %v239_v52  ;;  %v249_v46 = vmul.f32 0.0625, %v231_v7 }
 0x13f   :  { %v267_v63 = vsub.f32 %v958_v45, %v251_v56 }
 0x140   :  { %v1048_v59 = vsel %vm270_vm0, %v266_v54, 0.0  ;;  %v1052_v60 = vsel %vm270_vm0, %v255_v55, 0.0  ;;  %v265_v45 = vsub.f32 %v932_v29, %v249_v46 }
 0x141   :  { %v303_v61 = vmul.f32 %v1048_v59, %v1048_v59  ;;  %v292_v62 = vmul.f32 %v1052_v60, %v1052_v60  ;;  %v1062_v2 = vsel %vm270_vm0, %v267_v63, 0.0 }
 0x142   :  { %v304_v8 = vmul.f32 %v1062_v2, %v1062_v2 }
 0x143   :  { %v219_v44 = vpop.xlane.xlu1 %218 }
 0x144   :  { %v243_v0 = vmul.f32 0.0625, %v219_v44  ;;  %333 = vadd.xlane.f32.xlu0 %v303_v61  ;;  %311 = vadd.xlane.f32.xlu1 %v292_v62 }
 0x146   :  { %v259_v1 = vsub.f32 %v965_v48, %v243_v0  ;;  %v1075_v48 = vsel %vm270_vm0, %v265_v45, 0.0 }
 0x147   :  { %v302_v7 = vmul.f32 %v1075_v48, %v1075_v48 }
 0x148   :  { %v1066_v5 = vsel %vm270_vm0, %v259_v1, 0.0 }
 0x149   :  { %v296_v6 = vmul.f32 %v1066_v5, %v1066_v5 }
 0x14b   :  { %319 = vadd.xlane.f32.xlu2 %v296_v6 }
 0x14c   :  { %335 = vadd.xlane.f32.xlu1 %v304_v8 }
 0x153   :  { %331 = vadd.xlane.f32.xlu2 %v302_v7 }
 0x18f   :  { %v314_v9 = vpop.xlane.xlu2 %313  ;;  %v306_v10 = vpop.xlane.xlu1 %305 }
 0x190   :  { %v341_v11 = vmul.f32 0.0625, %v314_v9  ;;  %v337_v12 = vmul.f32 0.0625, %v306_v10 }
 0x192   :  { %v357_v13 = vadd.f32 1e-05, %v341_v11  ;;  %v353_v16 = vadd.f32 1e-05, %v337_v12 }
 0x194   :  { %790 = vrsqrt.f32 %v357_v13  ;;  %vm415_vm2 = vweird.f32 %v357_v13  ;;  %vm375_vm5 = vweird.f32 %v353_v16 }
 0x195   :  { %792 = vrsqrt.f32 %v353_v16 }
 0x197   :  { %v322_v29 = vpop.xlane.xlu0 %321  ;;  %v330_v23 = vpop.xlane.xlu1 %329 }
 0x198   :  { %v345_v17 = vmul.f32 0.0625, %v322_v29  ;;  %v349_v37 = vmul.f32 0.0625, %v330_v23 }
 0x19a   :  { %v1079_v18 = vpop.eup %790  ;;  %v1081_v19 = vadd.f32 1e-05, %v345_v17  ;;  %v1105_v61 = vadd.f32 1e-05, %v349_v37 }
 0x19b   :  { %v1083_v50 = vpop.eup %792  ;;  %v410_v20 = vmul.f32 %v1079_v18, %v357_v13  ;;  %vm416_vm1 = vweird.f32 %v1079_v18 }
 0x19c   :  { %v370_v21 = vmul.f32 %v1083_v50, %v353_v16  ;;  %794 = vrsqrt.f32 %v1081_v19  ;;  %vm376_vm3 = vweird.f32 %v1083_v50  ;;  %vm1117_vm4 = vmor %vm415_vm2, %vm416_vm1  ;;  %vm455_vm7 = vweird.f32 %v1081_v19 }
 0x19d   :  { %v411_v22 = vmul.f32 %v1079_v18, %v410_v20  ;;  %vm1129_vm6 = vmor %vm375_vm5, %vm376_vm3 }
 0x19e   :  { %v371_v26 = vmul.f32 %v1083_v50, %v370_v21 }
 0x19f   :  { %v308_v27 = vpop.xlane.xlu2 %307  ;;  %v316_v28 = vpop.xlane.xlu0 %315  ;;  %v412_v32 = vmul.f32 0.5, %v411_v22 }
 0x1a0   :  { %v338_v30 = vmul.f32 0.0625, %v308_v27  ;;  %v342_v31 = vmul.f32 0.0625, %v316_v28  ;;  %v372_v36 = vmul.f32 0.5, %v371_v26 }
 0x1a1   :  { %v413_v43 = vsub.f32 1.5, %v412_v32 }
 0x1a2   :  { %v1090_v33 = vadd.f32 1e-05, %v338_v30  ;;  %v1092_v34 = vadd.f32 1e-05, %v342_v31  ;;  %v1094_v35 = vpop.eup %794  ;;  %v373_v41 = vsub.f32 1.5, %v372_v36 }
 0x1a3   :  { %v450_v38 = vmul.f32 %v1094_v35, %v1081_v19  ;;  %v414_v54 = vmul.f32 %v1079_v18, %v413_v43  ;;  %vm456_vm8 = vweird.f32 %v1094_v35 }
 0x1a4   :  { %796 = vrsqrt.f32 %v1090_v33  ;;  %v374_v0 = vmul.f32 %v1083_v50, %v373_v41  ;;  %vm385_vm9 = vweird.f32 %v1090_v33  ;;  %vm1163_vm12 = vmor %vm455_vm7, %vm456_vm8  ;;  %vm425_vm13 = vweird.f32 %v1092_v34 }
 0x1a5   :  { %798 = vrsqrt.f32 %v1092_v34  ;;  %v451_v39 = vmul.f32 %v1094_v35, %v450_v38  ;;  %v418_v45 = vsel %vm1117_vm4, %v1079_v18, %v414_v54  ;;  %v1144_v18 = vld [vmem:[%s1344_s3] ss:$0 sm:$0xff] }
 0x1a6   :  { %v378_v12 = vsel %vm1129_vm6, %v1083_v50, %v374_v0  ;;  %v533_v20 = vmul.f32 %v418_v45, %v973_v57 }
 0x1a7   :  { %v324_v49 = vpop.xlane.xlu1 %323  ;;  %v310_v51 = vpop.xlane.xlu0 %309  ;;  %v452_v55 = vmul.f32 0.5, %v451_v39  ;;  %v529_v30 = vmul.f32 %v378_v12, %v977_v58 }
 0x1a8   :  { %v346_v52 = vmul.f32 0.0625, %v324_v49  ;;  %v339_v53 = vmul.f32 0.0625, %v310_v51  ;;  %v552_v39 = vmul.f32 %v1144_v18, %v533_v20 }
 0x1a9   :  { %v453_v8 = vsub.f32 1.5, %v452_v55 }
 0x1aa   :  { %v1103_v56 = vpop.eup %796  ;;  %v1107_v62 = vadd.f32 1e-05, %v346_v52  ;;  %v1109_v63 = vadd.f32 1e-05, %v339_v53  ;;  %v548_v52 = vmul.f32 %v1144_v18, %v529_v30 }
 0x1ab   :  { %v1111_v44 = vpop.eup %798  ;;  %v380_v46 = vmul.f32 %v1103_v56, %v1090_v33  ;;  %v454_v26 = vmul.f32 %v1094_v35, %v453_v8  ;;  %vm386_vm10 = vweird.f32 %v1103_v56 }
 0x1ac   :  { %v420_v6 = vmul.f32 %v1111_v44, %v1092_v34  ;;  %800 = vrsqrt.f32 %v1107_v62  ;;  %vm426_vm11 = vweird.f32 %v1111_v44  ;;  %vm387_vm14 = vmor %vm385_vm9, %vm386_vm10  ;;  %v1187_v34 = vld [vmem:[%s1345_s4] ss:$0 sm:$0xff]  ;;  %vm465_vm1 = vweird.f32 %v1107_v62  ;;  %s848_s4 = smov [#allocation2]  }
 0x1ad   :  { %v381_v7 = vmul.f32 %v1103_v56, %v380_v46  ;;  %802 = vrsqrt.f32 %v1109_v63  ;;  %v458_v49 = vsel %vm1163_vm12, %v1094_v35, %v454_v26  ;;  %vm427_vm15 = vmor %vm425_vm13, %vm426_vm11  ;;  %vm395_vm8 = vweird.f32 %v1109_v63  ;;  %s619_s27 = sshll.u32 %s848_s4, 4  ;;  %s620_s27 = int_to_ptr.vmem [resolvable:$true] %s619_s27 }
 0x1ae   :  { %804 = vrsqrt.f32 %v1105_v61  ;;  %v421_v10 = vmul.f32 %v1111_v44, %v420_v6  ;;  %v326_v11 = vpop.xlane.xlu2 %325  ;;  %v537_v6 = vmul.f32 %v458_v49, %v985_v3 }
 0x1af   :  { %v382_v13 = vmul.f32 0.5, %v381_v7  ;;  %v347_v16 = vmul.f32 0.0625, %v326_v11  ;;  %v318_v29 = vpop.xlane.xlu1 %317  ;;  %v328_v17 = vpop.xlane.xlu0 %327 }
 0x1b0   :  { %v422_v21 = vmul.f32 0.5, %v421_v10  ;;  %v343_v22 = vmul.f32 0.0625, %v318_v29  ;;  %v348_v23 = vmul.f32 0.0625, %v328_v17  ;;  %v556_v20 = vmul.f32 %v1144_v18, %v537_v6 }
 0x1b1   :  { %v383_v27 = vsub.f32 1.5, %v382_v13  ;;  %v1149_v50 = vadd.f32 1e-05, %v347_v16 }
 0x1b2   :  { %v1151_v28 = vpop.eup %800  ;;  %v423_v31 = vsub.f32 1.5, %v422_v21  ;;  %v1155_v32 = vadd.f32 1e-05, %v343_v22  ;;  %v1171_v43 = vadd.f32 1e-05, %v348_v23  ;;  %v575_v49 = vadd.f32 %v1187_v34, %v556_v20 }
 0x1b3   :  { %v1157_v57 = vpop.eup %802  ;;  %v384_v38 = vmul.f32 %v1103_v56, %v383_v27  ;;  %v460_v58 = vmul.f32 %v1151_v28, %v1107_v62  ;;  %806 = vrsqrt.f32 %v1149_v50  ;;  %vm466_vm0 = vweird.f32 %v1151_v28 }
 0x1b4   :  { %v1173_v37 = vpop.eup %804  ;;  %v424_v19 = vmul.f32 %v1111_v44, %v423_v31  ;;  %v390_v41 = vmul.f32 %v1157_v57, %v1109_v63  ;;  %808 = vrsqrt.f32 %v1155_v32  ;;  %vm467_vm2 = vmor %vm465_vm1, %vm466_vm0  ;;  %vm396_vm3 = vweird.f32 %v1157_v57 }
 0x1b5   :  { %v388_v51 = vsel %vm387_vm14, %v1103_v56, %v384_v38  ;;  %v461_v33 = vmul.f32 %v1151_v28, %v460_v58  ;;  %v490_v35 = vmul.f32 %v1173_v37, %v1105_v61  ;;  %810 = vrsqrt.f32 %v1171_v43  ;;  %vm1247_vm9 = vmor %vm395_vm8, %vm396_vm3 }
 0x1b6   :  { %v530_v53 = vmul.f32 %v388_v51, %v1003_v15  ;;  %v428_v54 = vsel %vm427_vm15, %v1111_v44, %v424_v19  ;;  %v391_v55 = vmul.f32 %v1157_v57, %v390_v41  ;;  %v571_v44 = vadd.f32 %v1187_v34, %v552_v39 }
 0x1b7   :  { %v534_v56 = vmul.f32 %v428_v54, %v999_v14  ;;  %v462_v0 = vmul.f32 0.5, %v461_v33  ;;  %v312_v46 = vpop.xlane.xlu1 %311  ;;  %v334_v1 = vpop.xlane.xlu0 %333  ;;  %v567_v14 = vadd.f32 %v1187_v34, %v548_v52  ;;  %v491_v39 = vmul.f32 %v1173_v37, %v490_v35 }
 0x1b8   :  { %v549_v45 = vmul.f32 %v1144_v18, %v530_v53  ;;  %v340_v8 = vmul.f32 0.0625, %v312_v46  ;;  %v351_v15 = vmul.f32 0.0625, %v334_v1  ;;  %v392_v12 = vmul.f32 0.5, %v391_v55 }
 0x1b9   :  { %v553_v7 = vmul.f32 %v1144_v18, %v534_v56  ;;  %v463_v9 = vsub.f32 1.5, %v462_v0  ;;  %v807_v10 = vpop.eup %806  ;;  %vm475_vm5 = vweird.f32 %v1149_v50  ;;  %vm485_vm10 = vweird.f32 %v1171_v43 }
 0x1ba   :  { %v568_v11 = vadd.f32 %v1187_v34, %v549_v45  ;;  %v1212_v13 = vadd.f32 1e-05, %v340_v8  ;;  %v1214_v3 = vpop.eup %808  ;;  %v470_v17 = vmul.f32 %v807_v10, %v1149_v50  ;;  %v1223_v23 = vadd.f32 1e-05, %v351_v15 }
 0x1bb   :  { %v572_v16 = vadd.f32 %v1187_v34, %v553_v7  ;;  %v464_v29 = vmul.f32 %v1151_v28, %v463_v9  ;;  %v430_v22 = vmul.f32 %v1214_v3, %v1155_v32  ;;  %v811_v26 = vpop.eup %810  ;;  %v393_v36 = vsub.f32 1.5, %v392_v12 }
 0x1bc   :  { %v716_v21 = vpack.c.bf16 %v568_v11, %v567_v14  ;;  %v471_v31 = vmul.f32 %v807_v10, %v470_v17  ;;  %812 = vrsqrt.f32 %v1212_v13  ;;  %v480_v38 = vmul.f32 %v811_v26, %v1171_v43 }
 0x1bd   :  { %v726_v27 = vpack.c.bf16 %v572_v16, %v571_v44  ;;  %v468_v30 = vsel %vm467_vm2, %v1151_v28, %v464_v29  ;;  %v431_v41 = vmul.f32 %v1214_v3, %v430_v22  ;;  %814 = vrsqrt.f32 %v1223_v23 }
 0x1be   :  { %717 = vst [vmem:[#allocation2] sm:$0xff] %v716_v21   ;;  %v538_v62 = vmul.f32 %v468_v30, %v1017_v25  ;;  %v320_v58 = vpop.xlane.xlu2 %319  ;;  %v472_v19 = vmul.f32 0.5, %v471_v31  ;;  %v481_v51 = vmul.f32 %v811_v26, %v480_v38  ;;  %vm476_vm4 = vweird.f32 %v807_v10 }
 0x1bf   :  { %754 = vst [vmem:[#allocation2 + $0x10] sm:$0xff] %v726_v27   ;;  %v336_v33 = vpop.xlane.xlu1 %335  ;;  %v344_v52 = vmul.f32 0.0625, %v320_v58  ;;  %v394_v54 = vmul.f32 %v1157_v57, %v393_v36  ;;  %v432_v0 = vmul.f32 0.5, %v431_v41  ;;  %vm477_vm6 = vmor %vm475_vm5, %vm476_vm4  ;;  %vm486_vm7 = vweird.f32 %v811_v26 }
 0x1c0   :  { %v557_v28 = vmul.f32 %v1144_v18, %v538_v62  ;;  %v473_v25 = vsub.f32 1.5, %v472_v19  ;;  %v482_v55 = vmul.f32 0.5, %v481_v51  ;;  %v352_v1 = vmul.f32 0.0625, %v336_v33  ;;  %vm487_vm11 = vmor %vm485_vm10, %vm486_vm7 }
 0x1c1   :  { %v1238_v46 = vadd.f32 1e-05, %v344_v52  ;;  %v492_v63 = vmul.f32 0.5, %v491_v39  ;;  %v398_v29 = vsel %vm1247_vm9, %v1157_v57, %v394_v54  ;;  %vm436_vm12 = vweird.f32 %v1214_v3 }
 0x1c2   :  { %v576_v53 = vadd.f32 %v1187_v34, %v557_v28  ;;  %v813_v35 = vpop.eup %812  ;;  %v474_v56 = vmul.f32 %v807_v10, %v473_v25  ;;  %v483_v45 = vsub.f32 1.5, %v482_v55  ;;  %v1256_v16 = vadd.f32 1e-05, %v352_v1 }
 0x1c3   :  { %v400_v8 = vmul.f32 %v813_v35, %v1212_v13  ;;  %816 = vrsqrt.f32 %v1238_v46  ;;  %v1243_v44 = vpop.eup %814  ;;  %vm406_vm13 = vweird.f32 %v813_v35  ;;  %v531_v57 = vmul.f32 %v398_v29, %v1013_v24 }
 0x1c4   :  { %v736_v6 = vpack.c.bf16 %v576_v53, %v575_v49  ;;  %v478_v15 = vsel %vm477_vm6, %v807_v10, %v474_v56  ;;  %v484_v9 = vmul.f32 %v811_v26, %v483_v45  ;;  %v433_v10 = vsub.f32 1.5, %v432_v0 }
 0x1c5   :  { %v539_v7 = vmul.f32 %v478_v15, %v1028_v40  ;;  %v401_v14 = vmul.f32 %v813_v35, %v400_v8  ;;  %v510_v12 = vmul.f32 %v1243_v44, %v1223_v23  ;;  %818 = vrsqrt.f32 %v1256_v16 }
 0x1c6   :  { %756 = vst [vmem:[#allocation2 + $0x20] sm:$0xff] %v736_v6   ;;  %v332_v11 = vpop.xlane.xlu2 %331  ;;  %v488_v17 = vsel %vm487_vm11, %v811_v26, %v484_v9  ;;  %v434_v26 = vmul.f32 %v1214_v3, %v433_v10  ;;  %vm405_vm14 = vweird.f32 %v1212_v13  ;;  %vm435_vm15 = vweird.f32 %v1155_v32 }
 0x1c7   :  { %v402_v40 = vmul.f32 0.5, %v401_v14  ;;  %v350_v20 = vmul.f32 0.0625, %v332_v11  ;;  %v558_v43 = vmul.f32 %v1144_v18, %v539_v7  ;;  %v540_v21 = vmul.f32 %v488_v17, %v1032_v42  ;;  %vm407_vm0 = vmor %vm405_vm14, %vm406_vm13 }
 0x1c8   :  { %v511_v22 = vmul.f32 %v1243_v44, %v510_v12  ;;  %v493_v19 = vsub.f32 1.5, %v492_v63  ;;  %vm1279_vm1 = vmor %vm435_vm15, %vm436_vm12  ;;  %v550_v51 = vmul.f32 %v1144_v18, %v531_v57  ;;  %vm516_vm2 = vweird.f32 %v1243_v44 }
 0x1c9   :  { %v403_v27 = vsub.f32 1.5, %v402_v40  ;;  %v1266_v30 = vadd.f32 1e-05, %v350_v20  ;;  %v817_v31 = vpop.eup %816  ;;  %v559_v62 = vmul.f32 %v1144_v18, %v540_v21  ;;  %v577_v58 = vadd.f32 %v1187_v34, %v558_v43 }
 0x1ca   :  { %v512_v36 = vmul.f32 0.5, %v511_v22  ;;  %v440_v42 = vmul.f32 %v817_v31, %v1238_v46  ;;  %v438_v32 = vsel %vm1279_vm1, %v1214_v3, %v434_v26  ;;  %vm496_vm3 = vweird.f32 %v1173_v37 }
 0x1cb   :  { %v404_v38 = vmul.f32 %v813_v35, %v403_v27  ;;  %820 = vrsqrt.f32 %v1266_v30  ;;  %v578_v39 = vadd.f32 %v1187_v34, %v559_v62  ;;  %v819_v28 = vpop.eup %818  ;;  %vm515_vm4 = vweird.f32 %v1223_v23 }
 0x1cc   :  { %v513_v24 = vsub.f32 1.5, %v512_v36  ;;  %v441_v49 = vmul.f32 %v817_v31, %v440_v42  ;;  %v520_v54 = vmul.f32 %v819_v28, %v1256_v16  ;;  %v535_v3 = vmul.f32 %v438_v32, %v1038_v47  ;;  %vm1300_vm6 = vmor %vm515_vm4, %vm516_vm2 }
 0x1cd   :  { %v408_v13 = vsel %vm407_vm0, %v813_v35, %v404_v38  ;;  %v741_v33 = vpack.c.bf16 %v578_v39, %v577_v58  ;;  %vm446_vm5 = vweird.f32 %v817_v31  ;;  %v494_v0 = vmul.f32 %v1173_v37, %v493_v19 }
 0x1ce   :  { %v532_v25 = vmul.f32 %v408_v13, %v1052_v60  ;;  %v514_v52 = vmul.f32 %v1243_v44, %v513_v24  ;;  %v442_v53 = vmul.f32 0.5, %v441_v49  ;;  %v521_v60 = vmul.f32 %v819_v28, %v520_v54 }
 0x1cf   :  { %757 = vst [vmem:[#allocation2 + $0x28] sm:$0xff] %v741_v33   ;;  %v569_v1 = vadd.f32 %v1187_v34, %v550_v51  ;;  %vm445_vm7 = vweird.f32 %v1238_v46  ;;  %vm495_vm8 = vweird.f32 %v1105_v61  ;;  %v554_v14 = vmul.f32 %v1144_v18, %v535_v3 }
 0x1d0   :  { %v551_v55 = vmul.f32 %v1144_v18, %v532_v25  ;;  %v443_v56 = vsub.f32 1.5, %v442_v53  ;;  %v518_v47 = vsel %vm1300_vm6, %v1243_v44, %v514_v52  ;;  %v522_v15 = vmul.f32 0.5, %v521_v60  ;;  %vm447_vm9 = vmor %vm445_vm7, %vm446_vm5 }
 0x1d1   :  { %v821_v35 = vpop.eup %820  ;;  %vm1312_vm10 = vmor %vm495_vm8, %vm496_vm3  ;;  %vm526_vm11 = vweird.f32 %v819_v28  ;;  %v543_v61 = vmul.f32 %v518_v47, %v1048_v59  ;;  %vm525_vm12 = vweird.f32 %v1256_v16  ;;  %v573_v20 = vadd.f32 %v1187_v34, %v554_v14 }
 0x1d2   :  { %v570_v6 = vadd.f32 %v1187_v34, %v551_v55  ;;  %v500_v23 = vmul.f32 %v821_v35, %v1266_v30  ;;  %v444_v8 = vmul.f32 %v817_v31, %v443_v56  ;;  %v523_v63 = vsub.f32 1.5, %v522_v15  ;;  %vm527_vm13 = vmor %vm525_vm12, %vm526_vm11 }
 0x1d3   :  { %v498_v46 = vsel %vm1312_vm10, %v1173_v37, %v494_v0  ;;  %vm506_vm14 = vweird.f32 %v821_v35  ;;  %vm505_vm15 = vweird.f32 %v1266_v30  ;;  %v562_v59 = vmul.f32 %v1144_v18, %v543_v61 }
 0x1d4   :  { %v721_v50 = vpack.c.bf16 %v570_v6, %v569_v1  ;;  %v501_v7 = vmul.f32 %v821_v35, %v500_v23  ;;  %v448_v11 = vsel %vm447_vm9, %v817_v31, %v444_v8  ;;  %v524_v12 = vmul.f32 %v819_v28, %v523_v63  ;;  %vm507_vm0 = vmor %vm505_vm15, %vm506_vm14 }
 0x1d5   :  { %v536_v44 = vmul.f32 %v448_v11, %v1066_v5  ;;  %v541_v40 = vmul.f32 %v498_v46, %v989_v4  ;;  %v581_v57 = vadd.f32 %v1187_v34, %v562_v59 }
 0x1d6   :  { %753 = vst [vmem:[#allocation2 + $0x8] sm:$0xff] %v721_v50   ;;  %v502_v10 = vmul.f32 0.5, %v501_v7  ;;  %v528_v43 = vsel %vm527_vm13, %v819_v28, %v524_v12 }
 0x1d7   :  { %v555_v29 = vmul.f32 %v1144_v18, %v536_v44  ;;  %v544_v37 = vmul.f32 %v528_v43, %v1062_v2  ;;  %v560_v31 = vmul.f32 %v1144_v18, %v541_v40 }
 0x1d8   :  { %v503_v17 = vsub.f32 1.5, %v502_v10 }
 0x1d9   :  { %v574_v5 = vadd.f32 %v1187_v34, %v555_v29  ;;  %v563_v22 = vmul.f32 %v1144_v18, %v544_v37  ;;  %v579_v62 = vadd.f32 %v1187_v34, %v560_v31 }
 0x1da   :  { %v504_v21 = vmul.f32 %v821_v35, %v503_v17 }
 0x1db   :  { %v731_v16 = vpack.c.bf16 %v574_v5, %v573_v20  ;;  %v582_v30 = vadd.f32 %v1187_v34, %v563_v22 }
 0x1dc   :  { %v508_v27 = vsel %vm507_vm0, %v821_v35, %v504_v21 }
 0x1dd   :  { %v542_v4 = vmul.f32 %v508_v27, %v1075_v48  ;;  %755 = vst [vmem:[#allocation2 + $0x18] sm:$0xff] %v731_v16   ;;  %v751_v2 = vpack.c.bf16 %v582_v30, %v581_v57 }
 0x1df   :  { %v561_v26 = vmul.f32 %v1144_v18, %v542_v4  ;;  %759 = vst [vmem:[#allocation2 + $0x38] sm:$0xff] %v751_v2  }
 0x1e1   :  { %v580_v36 = vadd.f32 %v1187_v34, %v561_v26 }
 0x1e3   :  { %v746_v48 = vpack.c.bf16 %v580_v36, %v579_v62 }
 0x1e5   :  { %758 = vst [vmem:[#allocation2 + $0x30] sm:$0xff] %v746_v48  }
 0x1e6   :  { %627 = dma.vmem_to_hbm [thread:$0]  %s620_s27, 1024, %s622_s30, [#allocation3], %s849_s6, %s849_s6, %s850_s7  }
 0x1e7   :  { %846 = dma.done.wait [#allocation3], 1024  }
 0x1e8   :  { %847 = vsyncadd [#allocation3], 4294966272 }
 0x1e9   :  { %632 = vsyncpa [#allocation3], 1 }

</bundles_post_ra>
